<compile_context>
chip_gen: v6e
topology: v6e:2x2x1
jax: 0.10.0
libtpu: 0.0.40
codegen_flags: <defaults>
</compile_context>

<pallas_src>
import functools

import jax
import jax.numpy as jnp
from jax import lax
from jax.experimental import pallas as pl
from jax.experimental.pallas import tpu as pltpu


def _round_up(x, m):
    return ((x + m - 1) // m) * m


def _pad2d(arr, rows, cols):
    pr, pc = rows - arr.shape[0], cols - arr.shape[1]
    if pr == 0 and pc == 0:
        return arr
    return jnp.pad(arr, ((0, pr), (0, pc)))


def _lora_linear_kernel(x_ref, w_ref, bias_ref, xa_ref, b_ref, o_ref, acc_ref):
    # Per-step tiles:
    #   x:    [tm, tk]        W:   [tn, tk]   (native [out, in] layout)
    #   bias: [1, tn] f32     xa:  [tm, r_pad] (pre-scaled x @ A.T)
    #   B:    [tn, r_pad]     out: [tm, tn]    acc: [tm, tn] f32
    k = pl.program_id(2)

    @pl.when(k == 0)
    def _init():
        # Fold bias into the accumulator init (removes a tail-step VPU add).
        acc_ref[...] = jnp.broadcast_to(bias_ref[...], acc_ref.shape)

    # Base path: acc += x @ W.T  (contract dim 1 of both operands; MXU takes
    # the transposed RHS natively, so no host-side W.T materialization).
    acc_ref[...] += lax.dot_general(
        x_ref[...], w_ref[...],
        dimension_numbers=(((1,), (1,)), ((), ())),
        preferred_element_type=jnp.float32)

    @pl.when(k == pl.num_programs(2) - 1)
    def _finalize():
        # LoRA up-projection: (x @ A.T * alpha/r) @ B.T — once per (i, j).
        lora = lax.dot_general(
            xa_ref[...], b_ref[...],
            dimension_numbers=(((1,), (1,)), ((), ())),
            preferred_element_type=jnp.float32)
        o_ref[...] = (acc_ref[...] + lora).astype(o_ref.dtype)


def lora_linear_forward(x, w, bias, a, b, alpha, r, *,
                        tm=512, tn=512, tk=512,
                        compute_dtype=jnp.bfloat16):
    """x: [..., in_dim]; w: [out_dim, in_dim]; a: [r, in_dim]; b: [out_dim, r]."""
    out_dim, in_dim = w.shape
    orig_shape = x.shape
    x2d = x.reshape(-1, in_dim)
    m = x2d.shape[0]
    scale = float(alpha) / float(r)

    if bias is None:
        bias = jnp.zeros((out_dim,), dtype=jnp.float32)

    # Adaptive tile sizes: never larger than the (aligned) problem dims.
    tm = min(tm, _round_up(m, 8))
    tn = min(tn, _round_up(out_dim, 128))
    tk = min(tk, _round_up(in_dim, 128))
    r_pad = _round_up(r, 128)

    m_pad = _round_up(m, tm)
    n_pad = _round_up(out_dim, tn)
    k_pad = _round_up(in_dim, tk)

    # LoRA down-projection hoisted out of the kernel: it is (i, k)-only work,
    # so doing it here once (tiny [m, r] output) removes ~33% of per-k MXU
    # cycles and all redundant A-matrix DMA.  The alpha/r scale folds in here.
    xa = jnp.dot(x2d, a.T, preferred_element_type=jnp.float32) * scale

    cd = jnp.dtype(compute_dtype)
    x_p = _pad2d(x2d, m_pad, k_pad).astype(cd)
    w_p = _pad2d(w, n_pad, k_pad).astype(cd)           # native [out, in] layout
    b_p = _pad2d(b, n_pad, r_pad).astype(cd)           # native [out, r] layout
    xa_p = _pad2d(xa, m_pad, r_pad).astype(cd)
    bias_p = _pad2d(bias.reshape(1, out_dim).astype(jnp.float32), 1, n_pad)

    grid = (m_pad // tm, n_pad // tn, k_pad // tk)

    out_itemsize = jnp.dtype(x.dtype).itemsize
    cd_itemsize = cd.itemsize

    # Faithful cost estimate for the kernel itself (xa GEMM handled by XLA).
    cost = pl.CostEstimate(
        flops=2 * m * in_dim * out_dim + 2 * m * r * out_dim,
        transcendentals=0,
        bytes_accessed=(x2d.size + w.size + b.size + xa.size) * cd_itemsize
        + bias.size * 4
        + m * out_dim * out_itemsize,
    )

    # Scoped VMEM estimate: double-buffered inputs/output + f32 accumulator.
    vmem_est = 2 * (tm * tk * cd_itemsize            # x
                    + tn * tk * cd_itemsize          # W
                    + tn * 4                          # bias (f32)
                    + tm * r_pad * cd_itemsize        # xa
                    + tn * r_pad * cd_itemsize        # B
                    + tm * tn * out_itemsize)         # out
    vmem_est += tm * tn * 4                           # acc scratch
    vmem_limit = min(64 * 1024 * 1024,
                     max(32 * 1024 * 1024, int(vmem_est * 5 // 4)))

    out = pl.pallas_call(
        _lora_linear_kernel,
        out_shape=jax.ShapeDtypeStruct((m_pad, n_pad), x.dtype),
        grid_spec=pltpu.PrefetchScalarGridSpec(
            num_scalar_prefetch=0,
            grid=grid,
            in_specs=[
                pl.BlockSpec((tm, tk), lambda i, j, k: (i, k)),      # x
                pl.BlockSpec((tn, tk), lambda i, j, k: (j, k)),      # W
                pl.BlockSpec((1, tn), lambda i, j, k: (0, j)),       # bias
                pl.BlockSpec((tm, r_pad), lambda i, j, k: (i, 0)),   # xa
                pl.BlockSpec((tn, r_pad), lambda i, j, k: (j, 0)),   # B
            ],
            out_specs=pl.BlockSpec((tm, tn), lambda i, j, k: (i, j)),
            scratch_shapes=[
                pltpu.VMEM((tm, tn), jnp.float32),   # base+bias accumulator
            ],
        ),
        compiler_params=pltpu.CompilerParams(
            dimension_semantics=("parallel", "parallel", "arbitrary"),
            vmem_limit_bytes=vmem_limit),
        cost_estimate=cost,
    )(x_p, w_p, bias_p, xa_p, b_p)

    return out[:m, :out_dim].reshape(*orig_shape[:-1], out_dim)


def reference_forward(x, w, bias, a, b, alpha, r):
    base = jnp.einsum("...i,oi->...o", x, w) + bias
    lora = jnp.einsum("...i,ri->...r", x, a)
    lora = jnp.einsum("...r,or->...o", lora, b)
    return base + lora * (alpha / r)


if __name__ == "__main__":
    # Small shapes consistent with the module's forward:
    batch, seq, in_dim, out_dim, r, alpha = 2, 8, 32, 64, 4, 8

    key = jax.random.PRNGKey(0)
    kx, kw, kb, ka = jax.random.split(key, 4)

    x = jax.random.normal(kx, (batch, seq, in_dim), dtype=jnp.float32)

    # Deterministic parameter init (mirrors nn.Linear + LoRA init shapes):
    w = jax.random.normal(kw, (out_dim, in_dim), dtype=jnp.float32) * (1.0 / jnp.sqrt(in_dim))
    bias = jax.random.normal(kb, (out_dim,), dtype=jnp.float32) * 0.01
    # A: kaiming-normal (linear nonlinearity -> std = 1/sqrt(in_dim)); B is
    # zeros in the module init, but use small nonzero B so the LoRA branch is
    # actually exercised numerically.
    A = jax.random.normal(ka, (r, in_dim), dtype=jnp.float32) * (1.0 / jnp.sqrt(in_dim))
    B = jnp.full((out_dim, r), 0.05, dtype=jnp.float32)

    y_ref = reference_forward(x, w, bias, A, B, alpha, r)

    # Strict-accuracy f32 path.
    y_f32 = lora_linear_forward(x, w, bias, A, B, alpha, r,
                                compute_dtype=jnp.float32)
    y_f32 = jax.block_until_ready(y_f32)
    assert y_f32.shape == (batch, seq, out_dim)
    assert jnp.allclose(y_f32, y_ref, atol=1e-4, rtol=1e-4), "f32 mismatch vs reference"

    # Default fast path: bf16 matmuls with f32 accumulation.
    y_bf16 = lora_linear_forward(x, w, bias, A, B, alpha, r)
    y_bf16 = jax.block_until_ready(y_bf16)
    assert y_bf16.shape == (batch, seq, out_dim)
    assert jnp.allclose(y_bf16, y_ref, atol=5e-2, rtol=5e-2), "bf16 mismatch vs reference"

    print("KERNEL_OK")
</pallas_src>

<mosaic_0001>
module attributes {stable_mosaic.version = 11 : i64} {
  func.func @_lora_linear_kernel(%arg0: i32, %arg1: i32, %arg2: i32, %arg3: memref<16x128xf32, #tpu.memory_space<vmem>>, %arg4: memref<128x128xf32, #tpu.memory_space<vmem>>, %arg5: memref<1x128xf32, #tpu.memory_space<vmem>>, %arg6: memref<16x128xf32, #tpu.memory_space<vmem>>, %arg7: memref<128x128xf32, #tpu.memory_space<vmem>>, %arg8: memref<16x128xf32, #tpu.memory_space<vmem>>, %arg9: memref<16x128xf32, #tpu.memory_space<vmem>>) attributes {dimension_semantics = [#tpu.dimension_semantics<parallel>, #tpu.dimension_semantics<parallel>, #tpu.dimension_semantics<arbitrary>], iteration_bounds = array<i64: 1, 1, 1>, scalar_prefetch = 0 : i64, scratch_operands = 1 : i64, tpu.core_type = #tpu.core_type<tc>, window_params = [{transform_indices = @transform_0, window_bounds = array<i64: 16, 128>}, {transform_indices = @transform_1, window_bounds = array<i64: 128, 128>}, {transform_indices = @transform_2, window_bounds = array<i64: 1, 128>}, {transform_indices = @transform_3, window_bounds = array<i64: 16, 128>}, {transform_indices = @transform_4, window_bounds = array<i64: 128, 128>}, {transform_indices = @transform_5, window_bounds = array<i64: 16, 128>}]} {
    %c0_i32 = arith.constant 0 : i32
    %0 = arith.cmpi eq, %arg2, %c0_i32 : i32
    %1 = arith.extui %0 : i1 to i32
    %c0_i32_0 = arith.constant 0 : i32
    %2 = arith.cmpi ne, %1, %c0_i32_0 : i32
    scf.if %2 {
      %c0_10 = arith.constant 0 : index
      %c0_11 = arith.constant 0 : index
      %12 = vector.load %arg5[%c0_10, %c0_11] : memref<1x128xf32, #tpu.memory_space<vmem>>, vector<1x128xf32>
      %13 = vector.shape_cast %12 : vector<1x128xf32> to vector<1x128xf32>
      %14 = vector.broadcast %13 : vector<1x128xf32> to vector<16x128xf32>
      %c0_12 = arith.constant 0 : index
      %c0_13 = arith.constant 0 : index
      %15 = vector.load %arg9[%c0_12, %c0_13] : memref<16x128xf32, #tpu.memory_space<vmem>>, vector<16x128xf32>
      tpu.vector_store %arg9[%c0_12, %c0_13], %14 {strides = array<i32>} : memref<16x128xf32, #tpu.memory_space<vmem>>, vector<16x128xf32>,
    } else {
    }
    %c0 = arith.constant 0 : index
    %c0_1 = arith.constant 0 : index
    %3 = vector.load %arg9[%c0, %c0_1] : memref<16x128xf32, #tpu.memory_space<vmem>>, vector<16x128xf32>
    %c0_2 = arith.constant 0 : index
    %c0_3 = arith.constant 0 : index
    %4 = vector.load %arg3[%c0_2, %c0_3] : memref<16x128xf32, #tpu.memory_space<vmem>>, vector<16x128xf32>
    %c0_4 = arith.constant 0 : index
    %c0_5 = arith.constant 0 : index
    %5 = vector.load %arg4[%c0_4, %c0_5] : memref<128x128xf32, #tpu.memory_space<vmem>>, vector<128x128xf32>
    %cst = arith.constant dense<0.000000e+00> : vector<16x128xf32>
    %6 = tpu.matmul %4, %5, %cst {dimension_numbers = #tpu.dot_dimension_numbers<[1], [1], [0], [0], [0, 0, 1, 0], [], []>} : vector<16x128xf32>, vector<128x128xf32>, vector<16x128xf32> -> vector<16x128xf32>
    %7 = arith.addf %3, %6 : vector<16x128xf32>
    %c0_6 = arith.constant 0 : index
    %c0_7 = arith.constant 0 : index
    %8 = vector.load %arg9[%c0_6, %c0_7] : memref<16x128xf32, #tpu.memory_space<vmem>>, vector<16x128xf32>
    tpu.vector_store %arg9[%c0_6, %c0_7], %7 {strides = array<i32>} : memref<16x128xf32, #tpu.memory_space<vmem>>, vector<16x128xf32>,
    %c0_i32_8 = arith.constant 0 : i32
    %9 = arith.cmpi eq, %arg2, %c0_i32_8 : i32
    %10 = arith.extui %9 : i1 to i32
    %c0_i32_9 = arith.constant 0 : i32
    %11 = arith.cmpi ne, %10, %c0_i32_9 : i32
    scf.if %11 {
      %c0_10 = arith.constant 0 : index
      %c0_11 = arith.constant 0 : index
      %12 = vector.load %arg6[%c0_10, %c0_11] : memref<16x128xf32, #tpu.memory_space<vmem>>, vector<16x128xf32>
      %c0_12 = arith.constant 0 : index
      %c0_13 = arith.constant 0 : index
      %13 = vector.load %arg7[%c0_12, %c0_13] : memref<128x128xf32, #tpu.memory_space<vmem>>, vector<128x128xf32>
      %cst_14 = arith.constant dense<0.000000e+00> : vector<16x128xf32>
      %14 = tpu.matmul %12, %13, %cst_14 {dimension_numbers = #tpu.dot_dimension_numbers<[1], [1], [0], [0], [0, 0, 1, 0], [], []>} : vector<16x128xf32>, vector<128x128xf32>, vector<16x128xf32> -> vector<16x128xf32>
      %c0_15 = arith.constant 0 : index
      %c0_16 = arith.constant 0 : index
      %15 = vector.load %arg9[%c0_15, %c0_16] : memref<16x128xf32, #tpu.memory_space<vmem>>, vector<16x128xf32>
      %16 = arith.addf %15, %14 : vector<16x128xf32>
      %c0_17 = arith.constant 0 : index
      %c0_18 = arith.constant 0 : index
      %17 = vector.load %arg8[%c0_17, %c0_18] : memref<16x128xf32, #tpu.memory_space<vmem>>, vector<16x128xf32>
      tpu.vector_store %arg8[%c0_17, %c0_18], %16 {strides = array<i32>} : memref<16x128xf32, #tpu.memory_space<vmem>>, vector<16x128xf32>,
    } else {
    }
    return
  }
  func.func @transform_0(%arg0: i32, %arg1: i32, %arg2: i32) -> (i32, i32) {
    %c0_i32 = arith.constant 0 : i32
    return %arg0, %arg2 : i32, i32
  }
  func.func @transform_1(%arg0: i32, %arg1: i32, %arg2: i32) -> (i32, i32) {
    %c0_i32 = arith.constant 0 : i32
    return %arg1, %arg2 : i32, i32
  }
  func.func @transform_2(%arg0: i32, %arg1: i32, %arg2: i32) -> (i32, i32) {
    %c0_i32 = arith.constant 0 : i32
    %c0_i32_0 = arith.constant 0 : i32
    return %c0_i32, %arg1 : i32, i32
  }
  func.func @transform_3(%arg0: i32, %arg1: i32, %arg2: i32) -> (i32, i32) {
    %c0_i32 = arith.constant 0 : i32
    %c0_i32_0 = arith.constant 0 : i32
    return %arg0, %c0_i32 : i32, i32
  }
  func.func @transform_4(%arg0: i32, %arg1: i32, %arg2: i32) -> (i32, i32) {
    %c0_i32 = arith.constant 0 : i32
    %c0_i32_0 = arith.constant 0 : i32
    return %arg1, %c0_i32 : i32, i32
  }
  func.func @transform_5(%arg0: i32, %arg1: i32, %arg2: i32) -> (i32, i32) {
    %c0_i32 = arith.constant 0 : i32
    return %arg0, %arg1 : i32, i32
  }
}

</mosaic_0001>

<bundles_post_ra>
// kernel: tpu_custom_call.1
= control target key start
LH: loop header
LB: loop body
LE: loop exit
PB: predicated region body
PF: predicated region fallthrough
CT: control target
= control target key end

     0   :  { %10 = vsyncpa [#allocation4], 0  ;;  %s601_s0 = inlined_call_operand.hbm [shape: f32[16,128], index: 0, kind: input, shape index: {}]   ;;  %s602_s1 = inlined_call_operand.hbm [shape: f32[128,128], index: 1, kind: input, shape index: {}]   ;;  %s603_s2 = inlined_call_operand.vmem [shape: f32[1,128], index: 2, kind: input, shape index: {}]   ;;  %s604_s3 = inlined_call_operand.hbm [shape: f32[16,128], index: 3, kind: input, shape index: {}]   ;;  %s605_s4 = inlined_call_operand.hbm [shape: f32[128,128], index: 4, kind: input, shape index: {}]   ;;  %s606_s5 = inlined_call_operand.hbm [shape: f32[16,128], index: 5, kind: output, shape index: {}]  }
   0x1   :  { %11 = vsyncpa [#allocation7], 0 }
   0x2   :  { %12 = vsyncpa [#allocation10], 0 }
   0x3   :  { %13 = vsyncpa [#allocation5], 0  ;;  %s531_s18 = smov [#allocation6]   ;;  %s532_s20 = smov [#allocation3]  }
   0x4   :  { %s31_s19 = sshll.u32 %s531_s18, 4  ;;  %s19_s21 = sshll.u32 %s532_s20, 4  ;;  %s32_s19 = int_to_ptr.vmem [resolvable:$true] %s31_s19  ;;  %s20_s21 = int_to_ptr.vmem [resolvable:$true] %s19_s21 }
   0x5   :  { %s431_s22 = scalar_lea.vmem %s32_s19, 2048  ;;  %p436_p1 = scmp.lt.s32.totalorder %s32_s19, %s32_s19 }
   0x6   :  { %p432_p0 = scmp.ne.s32.totalorder %s32_s19, %s431_s22  ;;  %p437_p2 = scmp.lt.s32.totalorder %s431_s22, %s431_s22 }
   0x8   :  { %p438_p3 = por %p437_p2, %p436_p1 }
   0xa   :  { %p439_p4 = pnand %p438_p3, %p432_p0 }
   0xc   :  { %442 = shalt.err (!%p439_p4)
}
   0xd   :  { %s533_s23 = smov 128   ;;  %s534_s24 = smov 8  }
   0xe   :  { %37 = dma.hbm_to_vmem [thread:$0]  %s602_s1, 2048, %s32_s19, [#allocation7], %s533_s23, %s533_s23, %s534_s24  }
   0xf   :  { %s451_s27 = scalar_lea.vmem %s20_s21, 256  ;;  %p456_p6 = scmp.lt.s32.totalorder %s20_s21, %s20_s21 }
  0x10   :  { %p452_p5 = scmp.ne.s32.totalorder %s20_s21, %s451_s27  ;;  %p457_p7 = scmp.lt.s32.totalorder %s451_s27, %s451_s27 }
  0x12   :  { %p458_p8 = por %p457_p7, %p456_p6 }
  0x14   :  { %p459_p9 = pnand %p458_p8, %p452_p5 }
  0x16   :  { %462 = shalt.err (!%p459_p9)
}
  0x17   :  { %25 = dma.hbm_to_vmem [thread:$0]  %s601_s0, 256, %s20_s21, [#allocation4], %s533_s23, %s533_s23, %s534_s24  }
  0x18   :  { %s535_s30 = smov [#allocation8]   ;;  %s536_s7 = smov [#allocation9]  }
  0x19   :  { %s45_s6 = sshll.u32 %s535_s30, 4  ;;  %s57_s8 = sshll.u32 %s536_s7, 4  ;;  %s46_s6 = int_to_ptr.vmem [resolvable:$true] %s45_s6  ;;  %s58_s8 = int_to_ptr.vmem [resolvable:$true] %s57_s8 }
  0x1a   :  { %s471_s1 = scalar_lea.vmem %s46_s6, 256  ;;  %p476_p11 = scmp.lt.s32.totalorder %s46_s6, %s46_s6 }
  0x1b   :  { %p472_p10 = scmp.ne.s32.totalorder %s46_s6, %s471_s1  ;;  %p477_p12 = scmp.lt.s32.totalorder %s471_s1, %s471_s1 }
  0x1d   :  { %p478_p13 = por %p477_p12, %p476_p11 }
  0x1f   :  { %p479_p0 = pnand %p478_p13, %p472_p10 }
  0x21   :  { %482 = shalt.err (!%p479_p0)
}
  0x22   :  { %51 = dma.hbm_to_vmem [thread:$0]  %s604_s3, 256, %s46_s6, [#allocation7], %s533_s23, %s533_s23, %s534_s24  }
  0x23   :  { %s491_s0 = scalar_lea.vmem %s58_s8, 2048  ;;  %p496_p2 = scmp.lt.s32.totalorder %s58_s8, %s58_s8 }
  0x24   :  { %p492_p1 = scmp.ne.s32.totalorder %s58_s8, %s491_s0  ;;  %p497_p3 = scmp.lt.s32.totalorder %s491_s0, %s491_s0 }
  0x26   :  { %p498_p4 = por %p497_p3, %p496_p2 }
  0x28   :  { %p499_p5 = pnand %p498_p4, %p492_p1 }
  0x2a   :  { %502 = shalt.err (!%p499_p5)
}
  0x2b   :  { %63 = dma.hbm_to_vmem [thread:$0]  %s605_s4, 2048, %s58_s8, [#allocation10], %s533_s23, %s533_s23, %s534_s24  }
  0x2c   :  { %523 = dma.done.wait [#allocation4], 256  }
  0x2d   :  { %524 = vsyncadd [#allocation4], 4294967040 }
  0x2e   :  { %525 = dma.done.wait [#allocation7], 2304  }
  0x2f   :  { %526 = vsyncadd [#allocation7], 4294964992 }
  0x30   :  { %527 = dma.done.wait [#allocation10], 2048  }
  0x31   :  { %528 = vsyncadd [#allocation10], 4294965248  ;;  %v108_v0 = vld [vmem:[#allocation6 + $0x78] sm:$0xff]  ;;  %v208_v1 = vld [vmem:[#allocation9 + $0x78] sm:$0xff]  ;;  %s537_s13 = smov [#allocation11]  }
  0x32   :  { %v107_v2 = vld [vmem:[#allocation6 + $0x70] sm:$0xff]  ;;  %346 = vmatprep.subr.mxu0 %v108_v0  ;;  %381 = vmatprep.subr.mxu1 %v208_v1  ;;  %v207_v3 = vld [vmem:[#allocation9 + $0x70] sm:$0xff]  ;;  %v106_v4 = vld [vmem:[#allocation6 + $0x68] sm:$0xff]  ;;  %s295_s14 = sshll.u32 %s537_s13, 4  ;;  %s296_s14 = int_to_ptr.vmem [resolvable:$true] %s295_s14 }
  0x33   :  { %347 = vmatpush3.xpose.msra.mxu0 %v108_v0  ;;  %382 = vmatpush3.xpose.msra.mxu1 %v208_v1  ;;  %v206_v5 = vld [vmem:[#allocation9 + $0x68] sm:$0xff]  ;;  %v105_v6 = vld [vmem:[#allocation6 + $0x60] sm:$0xff]  ;;  %v205_v7 = vld [vmem:[#allocation9 + $0x60] sm:$0xff]  ;;  %s503_s15 = scalar_lea.vmem %s296_s14, 256  ;;  %p508_p7 = scmp.lt.s32.totalorder %s296_s14, %s296_s14 }
  0x34   :  { %348 = vmatprep.subr.mxu0 %v107_v2  ;;  %383 = vmatprep.subr.mxu1 %v207_v3  ;;  %v91_v8 = vld [vmem:[#allocation3] sm:$0xff]  ;;  %v191_v9 = vld [vmem:[#allocation8] sm:$0xff]  ;;  %v104_v10 = vld [vmem:[#allocation6 + $0x58] sm:$0xff]  ;;  %p504_p6 = scmp.ne.s32.totalorder %s296_s14, %s503_s15  ;;  %p509_p8 = scmp.lt.s32.totalorder %s503_s15, %s503_s15 }
  0x35   :  { %v204_v11 = vld [vmem:[#allocation9 + $0x58] sm:$0xff]  ;;  %378 = vmatprep.mubr.f32.mxu0 %v91_v8  ;;  %413 = vmatprep.mubr.f32.mxu1 %v191_v9  ;;  %v103_v12 = vld [vmem:[#allocation6 + $0x50] sm:$0xff]  ;;  %v203_v13 = vld [vmem:[#allocation9 + $0x50] sm:$0xff] }
  0x36   :  { %v102_v14 = vld [vmem:[#allocation6 + $0x48] sm:$0xff]  ;;  %v202_v15 = vld [vmem:[#allocation9 + $0x48] sm:$0xff]  ;;  %v101_v16 = vld [vmem:[#allocation6 + $0x40] sm:$0xff]  ;;  %p510_p9 = por %p509_p8, %p508_p7 }
  0x37   :  { %349 = vmatpush3.xpose.msra.mxu0 %v107_v2  ;;  %384 = vmatpush3.xpose.msra.mxu1 %v207_v3  ;;  %v201_v17 = vld [vmem:[#allocation9 + $0x40] sm:$0xff]  ;;  %v100_v18 = vld [vmem:[#allocation6 + $0x38] sm:$0xff]  ;;  %v200_v19 = vld [vmem:[#allocation9 + $0x38] sm:$0xff] }
  0x38   :  { %350 = vmatprep.subr.mxu0 %v106_v4  ;;  %385 = vmatprep.subr.mxu1 %v206_v5  ;;  %v99_v20 = vld [vmem:[#allocation6 + $0x30] sm:$0xff]  ;;  %v199_v21 = vld [vmem:[#allocation9 + $0x30] sm:$0xff]  ;;  %v98_v22 = vld [vmem:[#allocation6 + $0x28] sm:$0xff]  ;;  %p511_p10 = pnand %p510_p9, %p504_p6 }
  0x39   :  { %v198_v23 = vld [vmem:[#allocation9 + $0x28] sm:$0xff]  ;;  %v97_v24 = vld [vmem:[#allocation6 + $0x20] sm:$0xff]  ;;  %v197_v25 = vld [vmem:[#allocation9 + $0x20] sm:$0xff] }
  0x3a   :  { %v96_v26 = vld [vmem:[#allocation6 + $0x18] sm:$0xff]  ;;  %v196_v27 = vld [vmem:[#allocation9 + $0x18] sm:$0xff]  ;;  %v95_v28 = vld [vmem:[#allocation6 + $0x10] sm:$0xff] }
  0x3b   :  { %351 = vmatpush3.xpose.msra.mxu0 %v106_v4  ;;  %386 = vmatpush3.xpose.msra.mxu1 %v206_v5  ;;  %v195_v29 = vld [vmem:[#allocation9 + $0x10] sm:$0xff]  ;;  %v94_v30 = vld [vmem:[#allocation6 + $0x8] sm:$0xff]  ;;  %v194_v31 = vld [vmem:[#allocation9 + $0x8] sm:$0xff] }
  0x3c   :  { %352 = vmatprep.subr.mxu0 %v105_v6  ;;  %387 = vmatprep.subr.mxu1 %v205_v7  ;;  %v93_v32 = vld [vmem:[#allocation6] sm:$0xff]  ;;  %v193_v33 = vld [vmem:[#allocation9] sm:$0xff]  ;;  %v92_v34 = vld [vmem:[#allocation3 + $0x8] sm:$0xff] }
  0x3d   :  { %v192_v35 = vld [vmem:[#allocation8 + $0x8] sm:$0xff]  ;;  %v309_v36 = vld [vmem:[%s603_s2] ss:$0 sm:$0xff] }
  0x3f   :  { %353 = vmatpush3.xpose.msra.mxu0 %v105_v6  ;;  %388 = vmatpush3.xpose.msra.mxu1 %v205_v7 }
  0x40   :  { %354 = vmatprep.subr.mxu0 %v104_v10  ;;  %389 = vmatprep.subr.mxu1 %v204_v11 }
  0x43   :  { %355 = vmatpush3.xpose.msra.mxu0 %v104_v10  ;;  %390 = vmatpush3.xpose.msra.mxu1 %v204_v11 }
  0x44   :  { %356 = vmatprep.subr.mxu0 %v103_v12  ;;  %391 = vmatprep.subr.mxu1 %v203_v13 }
  0x47   :  { %357 = vmatpush3.xpose.msra.mxu0 %v103_v12  ;;  %392 = vmatpush3.xpose.msra.mxu1 %v203_v13 }
  0x48   :  { %358 = vmatprep.subr.mxu0 %v102_v14  ;;  %393 = vmatprep.subr.mxu1 %v202_v15 }
  0x4b   :  { %359 = vmatpush3.xpose.msra.mxu0 %v102_v14  ;;  %394 = vmatpush3.xpose.msra.mxu1 %v202_v15 }
  0x4c   :  { %360 = vmatprep.subr.mxu0 %v101_v16  ;;  %395 = vmatprep.subr.mxu1 %v201_v17 }
  0x4f   :  { %361 = vmatpush3.xpose.msra.mxu0 %v101_v16  ;;  %396 = vmatpush3.xpose.msra.mxu1 %v201_v17 }
  0x50   :  { %362 = vmatprep.subr.mxu0 %v100_v18  ;;  %397 = vmatprep.subr.mxu1 %v200_v19 }
  0x53   :  { %363 = vmatpush3.xpose.msra.mxu0 %v100_v18  ;;  %398 = vmatpush3.xpose.msra.mxu1 %v200_v19 }
  0x54   :  { %364 = vmatprep.subr.mxu0 %v99_v20  ;;  %399 = vmatprep.subr.mxu1 %v199_v21 }
  0x57   :  { %365 = vmatpush3.xpose.msra.mxu0 %v99_v20  ;;  %400 = vmatpush3.xpose.msra.mxu1 %v199_v21 }
  0x58   :  { %366 = vmatprep.subr.mxu0 %v98_v22  ;;  %401 = vmatprep.subr.mxu1 %v198_v23 }
  0x5b   :  { %367 = vmatpush3.xpose.msra.mxu0 %v98_v22  ;;  %402 = vmatpush3.xpose.msra.mxu1 %v198_v23 }
  0x5c   :  { %368 = vmatprep.subr.mxu0 %v97_v24  ;;  %403 = vmatprep.subr.mxu1 %v197_v25 }
  0x5f   :  { %369 = vmatpush3.xpose.msra.mxu0 %v97_v24  ;;  %404 = vmatpush3.xpose.msra.mxu1 %v197_v25 }
  0x60   :  { %370 = vmatprep.subr.mxu0 %v96_v26  ;;  %405 = vmatprep.subr.mxu1 %v196_v27 }
  0x63   :  { %371 = vmatpush3.xpose.msra.mxu0 %v96_v26  ;;  %406 = vmatpush3.xpose.msra.mxu1 %v196_v27 }
  0x64   :  { %372 = vmatprep.subr.mxu0 %v95_v28  ;;  %407 = vmatprep.subr.mxu1 %v195_v29 }
  0x67   :  { %373 = vmatpush3.xpose.msra.mxu0 %v95_v28  ;;  %408 = vmatpush3.xpose.msra.mxu1 %v195_v29 }
  0x68   :  { %374 = vmatprep.subr.mxu0 %v94_v30  ;;  %409 = vmatprep.subr.mxu1 %v194_v31 }
  0x6b   :  { %375 = vmatpush3.xpose.msra.mxu0 %v94_v30  ;;  %410 = vmatpush3.xpose.msra.mxu1 %v194_v31 }
  0x6c   :  { %376 = vmatprep.subr.mxu0 %v93_v32  ;;  %411 = vmatprep.subr.mxu1 %v193_v33 }
  0x6f   :  { %377 = vmatpush3.xpose.msra.mxu0 %v93_v32  ;;  %412 = vmatpush3.xpose.msra.mxu1 %v193_v33 }
  0x72   :  { %379 = vmatmul.mubr.f32.vlgmr.msra.gmra.mxu0 %v92_v34  ;;  %414 = vmatmul.mubr.f32.vlgmr.msra.gmra.mxu1 %v192_v35 }
 0x132   :  { %v380_v37 = vpop.f32.mrf.mxu0  ;;  %v415_v38 = vpop.f32.mrf.mxu1 }
 0x133   :  { %v185_v39 = vadd.f32 %v380_v37, %v309_v36 }
 0x134   :  { %v175_v40 = vpop.f32.mrf.mxu0  ;;  %v275_v43 = vpop.f32.mrf.mxu1 }
 0x135   :  { %v287_v41 = vadd.f32 %v415_v38, %v185_v39  ;;  %v184_v42 = vadd.f32 %v309_v36, %v175_v40 }
 0x137   :  { %289 = vst [vmem:[#allocation11 + $0x8] sm:$0xff] %v287_v41  ;;  %v286_v44 = vadd.f32 %v275_v43, %v184_v42 }
 0x139   :  { %288 = vst [vmem:[#allocation11] sm:$0xff] %v286_v44 }
 0x13a   :  { %514 = shalt.err (!%p511_p10)
}
 0x13b   :  { %301 = dma.vmem_to_hbm [thread:$0]  %s296_s14, 256, %s606_s5, [#allocation5], %s533_s23, %s533_s23, %s534_s24  }
 0x13c   :  { %529 = dma.done.wait [#allocation5], 256  }
 0x13d   :  { %530 = vsyncadd [#allocation5], 4294967040 }
 0x13e   :  { %305 = vsyncpa [#allocation4], 1 }
 0x13f   :  { %306 = vsyncpa [#allocation7], 1 }
 0x140   :  { %307 = vsyncpa [#allocation10], 1 }
 0x141   :  { %308 = vsyncpa [#allocation5], 1 }

</bundles_post_ra>
